<compile_context>
chip_gen: v7x
topology: tpu7x:2x2x1
jax: 0.10.0
libtpu: 0.0.40
codegen_flags: <defaults>
</compile_context>

<pallas_src>
import functools

import jax
import jax.numpy as jnp
import numpy as np
from jax.experimental import pallas as pl
from jax.experimental.pallas import tpu as pltpu


# --------------------------------------------------------------------------- #
# Stage 1: projections + attention-score matmul
# --------------------------------------------------------------------------- #
def _proj_kernel(*refs, residual, hc):
    if residual:
        x_ref, w_ref, b_lin_ref, att_ref, feat_ref, scores_ref, h_in_ref = refs
    else:
        x_ref, w_ref, att_ref, feat_ref, scores_ref = refs

    # bf16 MXU inputs, f32 accumulation (K = in_dim is small).
    x = x_ref[...].astype(jnp.bfloat16)
    w = w_ref[...].astype(jnp.bfloat16)
    xw = jnp.dot(x, w, preferred_element_type=jnp.float32)        # [T, hc] or [T, 2*hc]

    feat = xw[:, :hc]                                             # GATConv projection [T, hc]
    # scores = feat @ A  -> [a_src | a_dst], one tiny matmul (kept f32: exp-sensitive path).
    scores_ref[...] = jnp.dot(feat, att_ref[...],
                              preferred_element_type=jnp.float32)
    feat_ref[...] = feat.astype(feat_ref.dtype)                   # stored bf16 for stage 2

    if residual:
        # h_in = self.linear(x): second half of the fused matmul + bias.
        h_in_ref[...] = xw[:, hc:] + b_lin_ref[...]


# --------------------------------------------------------------------------- #
# Stage 2: masked attention softmax + aggregation, tiled over destination nodes
# --------------------------------------------------------------------------- #
def _attn_kernel(adj_ref, a_dst_ref, a_src_t_ref, feat_ref, bias_ref, out_ref,
                 *, num_heads, out_dim, neg_slope):
    mask = adj_ref[...] > 0                                       # [T, N] bool (adj is bf16)

    head_outs = []
    for h in range(num_heads):
        # e[i, j] = leaky_relu(a_dst[i] + a_src[j]); all elementwise math stays f32.
        e = a_dst_ref[:, h:h + 1] + a_src_t_ref[h:h + 1, :]       # [T,1] + [1,N] -> [T,N]
        e = jnp.where(e > 0, e, neg_slope * e)
        e = jnp.where(mask, e, -1e30)
        e = e - jnp.max(e, axis=1, keepdims=True)
        p = jnp.exp(e)                                            # masked entries underflow to 0
        denom = jnp.sum(p, axis=1, keepdims=True)                 # >= 1 thanks to self-loops
        alpha = p * pl.reciprocal(denom, approx=True)
        fh = feat_ref[:, h * out_dim:(h + 1) * out_dim]           # [N, C] bf16
        head_outs.append(jnp.dot(alpha.astype(jnp.bfloat16), fh,
                                 preferred_element_type=jnp.float32))

    out_ref[...] = (jnp.concatenate(head_outs, axis=1) + bias_ref[...]).astype(out_ref.dtype)


# --------------------------------------------------------------------------- #
# Stage 3: BatchNorm1d (batch stats) + ELU (+ residual)
# --------------------------------------------------------------------------- #
def _bn_elu_kernel(*refs, residual, bn_eps):
    if residual:
        h_ref, h_in_ref, gamma_ref, beta_ref, out_ref = refs
    else:
        h_ref, gamma_ref, beta_ref, out_ref = refs

    h = h_ref[...]
    inv_n = 1.0 / h.shape[0]
    mean = jnp.sum(h, axis=0, keepdims=True) * inv_n
    diff = h - mean
    var = jnp.sum(diff * diff, axis=0, keepdims=True) * inv_n     # biased variance
    hn = diff * jax.lax.rsqrt(var + bn_eps)
    hn = hn * gamma_ref[...] + beta_ref[...]
    act = jnp.where(hn > 0, hn, jnp.exp(hn) - 1.0)                # ELU(alpha=1)
    if residual:
        act = h_in_ref[...] + act
    out_ref[...] = act.astype(out_ref.dtype)


# --------------------------------------------------------------------------- #
# Wrapper
# --------------------------------------------------------------------------- #
def _pick_tile(n, cap=128):
    # 128-granular tiles map cleanly on v5e's 4x128 MXU and keep VMEM small on v7x.
    for t in (cap, 64, 32, 16, 8):
        if t <= n and n % t == 0:
            return t
    return n


def gat_layer(x, adj, params, *, num_heads, out_dim, residual=False):
    n, in_dim = x.shape
    hc = num_heads * out_dim
    tile = _pick_tile(n)
    grid = (n // tile,)

    # Block-diagonal attention-vector matrix A: feat @ A -> [a_src | a_dst]  ([N, 2H]).
    att_mat = jnp.zeros((hc, 2 * num_heads), jnp.float32)
    for h in range(num_heads):
        att_mat = att_mat.at[h * out_dim:(h + 1) * out_dim, h].set(params["att_src"][h])
        att_mat = att_mat.at[h * out_dim:(h + 1) * out_dim, num_heads + h].set(params["att_dst"][h])

    cp = pltpu.CompilerParams(dimension_semantics=("parallel",),
                              vmem_limit_bytes=32 * 1024 * 1024)

    # ---- stage 1: projections -------------------------------------------------
    if residual:
        w_cat = jnp.concatenate([params["w_att"], params["w_lin"]], axis=1)   # fused matmul
        proj_ins = (x, w_cat, params["b_lin"], att_mat)
        proj_in_specs = [
            pl.BlockSpec((tile, in_dim), lambda i: (i, 0)),
            pl.BlockSpec((in_dim, 2 * hc), lambda i: (0, 0)),
            pl.BlockSpec((1, hc), lambda i: (0, 0)),
            pl.BlockSpec((hc, 2 * num_heads), lambda i: (0, 0)),
        ]
        proj_out_shape = (
            jax.ShapeDtypeStruct((n, hc), jnp.bfloat16),
            jax.ShapeDtypeStruct((n, 2 * num_heads), jnp.float32),
            jax.ShapeDtypeStruct((n, hc), jnp.float32),
        )
        proj_out_specs = (
            pl.BlockSpec((tile, hc), lambda i: (i, 0)),
            pl.BlockSpec((tile, 2 * num_heads), lambda i: (i, 0)),
            pl.BlockSpec((tile, hc), lambda i: (i, 0)),
        )
    else:
        # residual=False: w_lin / b_lin are dead -> never loaded, never multiplied.
        proj_ins = (x, params["w_att"], att_mat)
        proj_in_specs = [
            pl.BlockSpec((tile, in_dim), lambda i: (i, 0)),
            pl.BlockSpec((in_dim, hc), lambda i: (0, 0)),
            pl.BlockSpec((hc, 2 * num_heads), lambda i: (0, 0)),
        ]
        proj_out_shape = (
            jax.ShapeDtypeStruct((n, hc), jnp.bfloat16),
            jax.ShapeDtypeStruct((n, 2 * num_heads), jnp.float32),
        )
        proj_out_specs = (
            pl.BlockSpec((tile, hc), lambda i: (i, 0)),
            pl.BlockSpec((tile, 2 * num_heads), lambda i: (i, 0)),
        )

    proj_out = pl.pallas_call(
        functools.partial(_proj_kernel, residual=residual, hc=hc),
        out_shape=proj_out_shape,
        grid_spec=pltpu.PrefetchScalarGridSpec(
            num_scalar_prefetch=0, grid=grid,
            in_specs=proj_in_specs, out_specs=proj_out_specs),
        compiler_params=cp,
    )(*proj_ins)

    if residual:
        feat_bf16, scores, h_in = proj_out
    else:
        feat_bf16, scores = proj_out
        h_in = None

    a_src_t = scores[:, :num_heads].T          # [H, N]  (layout plumbing outside the kernel)
    a_dst = scores[:, num_heads:]              # [N, H]

    # ---- stage 2: attention over destination-node tiles -----------------------
    adj_bf16 = adj.astype(jnp.bfloat16)        # halves adj DMA/VMEM; 0/1 exact in bf16
    hcat = pl.pallas_call(
        functools.partial(_attn_kernel, num_heads=num_heads, out_dim=out_dim, neg_slope=0.2),
        out_shape=jax.ShapeDtypeStruct((n, hc), jnp.float32),
        grid_spec=pltpu.PrefetchScalarGridSpec(
            num_scalar_prefetch=0, grid=grid,
            in_specs=[
                pl.BlockSpec((tile, n), lambda i: (i, 0)),           # adj rows for this dst tile
                pl.BlockSpec((tile, num_heads), lambda i: (i, 0)),   # a_dst (this tile)
                pl.BlockSpec((num_heads, n), lambda i: (0, 0)),      # a_src (all sources)
                pl.BlockSpec((n, hc), lambda i: (0, 0)),             # feat  (all sources, bf16)
                pl.BlockSpec((1, hc), lambda i: (0, 0)),             # GATConv bias
            ],
            out_specs=pl.BlockSpec((tile, hc), lambda i: (i, 0))),
        compiler_params=cp,
    )(adj_bf16, a_dst, a_src_t, feat_bf16, params["bias"])

    # ---- stage 3: BatchNorm1d + ELU (+ residual) ------------------------------
    # TODO(synk): for very large N, split BN into a two-pass (stats-accumulate / apply) grid;
    # here the [N, H*C] activations comfortably fit a single VMEM block.
    bn_ins = [hcat, params["gamma"], params["beta"]]
    if residual:
        bn_ins.insert(1, h_in)
    out = pl.pallas_call(
        functools.partial(_bn_elu_kernel, residual=residual, bn_eps=1e-5),
        out_shape=jax.ShapeDtypeStruct((n, hc), jnp.float32),
        in_specs=[pl.BlockSpec(memory_space=pltpu.MemorySpace.VMEM)] * len(bn_ins),
        out_specs=pl.BlockSpec(memory_space=pltpu.MemorySpace.VMEM),
        compiler_params=pltpu.CompilerParams(vmem_limit_bytes=32 * 1024 * 1024),
    )(*bn_ins)
    return out


# --------------------------------------------------------------------------- #
# Pure-JAX reference mirroring the PyTorch forward
# --------------------------------------------------------------------------- #
def gat_layer_ref(x, adj, params, *, num_heads, out_dim, residual=False):
    with jax.default_matmul_precision("highest"):
        hc = num_heads * out_dim
        h_in = x @ params["w_lin"] + params["b_lin"]
        feat = (x @ params["w_att"]).reshape(-1, num_heads, out_dim)
        a_src = jnp.einsum("nhc,hc->nh", feat, params["att_src"])
        a_dst = jnp.einsum("nhc,hc->nh", feat, params["att_dst"])
        e = a_dst[:, None, :] + a_src[None, :, :]               # [dst, src, head]
        e = jnp.where(e > 0, e, 0.2 * e)
        mask = adj[:, :, None] > 0.5
        e = jnp.where(mask, e, -1e30)
        e = e - e.max(axis=1, keepdims=True)
        p = jnp.exp(e) * mask
        alpha = p / p.sum(axis=1, keepdims=True)
        out3 = jnp.einsum("ijh,jhc->ihc", alpha, feat)
        h = out3.reshape(-1, hc) + params["bias"]
        mean = h.mean(0, keepdims=True)
        var = ((h - mean) ** 2).mean(0, keepdims=True)
        h = (h - mean) * jax.lax.rsqrt(var + 1e-5) * params["gamma"] + params["beta"]
        h = jnp.where(h > 0, h, jnp.exp(h) - 1.0)
        if residual:
            h = h_in + h
        return h


if __name__ == "__main__":
    key = jax.random.PRNGKey(0)
    # Enough nodes to exercise the dst-tile grid (tile=128 -> grid of 2) and fill the MXU,
    # while staying small (adj is only 256x256).
    N, in_dim, out_dim, num_heads = 256, 32, 128, 2
    hc = out_dim * num_heads
    ks = jax.random.split(key, 9)

    x = jax.random.normal(ks[0], (N, in_dim), jnp.float32)

    # Deterministic graph (no duplicate edges): i -> (i+1)%N and i -> (i+3)%N.
    src = jnp.concatenate([jnp.arange(N), jnp.arange(N)])
    dst = jnp.concatenate([(jnp.arange(N) + 1) % N, (jnp.arange(N) + 3) % N])
    edge_index = jnp.stack([src, dst]).astype(jnp.int32)   # [2, E], PyG convention

    # Dense adjacency adj[dst, src] with self-loops (GATConv add_self_loops=True).
    # TODO(synk): sparse per-edge (edge_index) gather/scatter softmax has no clean
    # rectangular Pallas access pattern; the graph is densified in the JAX wrapper.
    adj = jnp.zeros((N, N), jnp.float32).at[edge_index[1], edge_index[0]].set(1.0)
    adj = jnp.maximum(adj, jnp.eye(N, dtype=jnp.float32))

    params = {
        "w_lin":   jax.random.normal(ks[1], (in_dim, hc), jnp.float32) * 0.1,
        "b_lin":   jax.random.normal(ks[2], (1, hc), jnp.float32) * 0.1,
        "w_att":   jax.random.normal(ks[3], (in_dim, hc), jnp.float32) * 0.1,
        "att_src": jax.random.normal(ks[4], (num_heads, out_dim), jnp.float32) * 0.1,
        "att_dst": jax.random.normal(ks[5], (num_heads, out_dim), jnp.float32) * 0.1,
        "bias":    jax.random.normal(ks[6], (1, hc), jnp.float32) * 0.1,
        "gamma":   1.0 + jax.random.normal(ks[7], (1, hc), jnp.float32) * 0.1,
        "beta":    jax.random.normal(ks[8], (1, hc), jnp.float32) * 0.1,
    }

    # Tolerance accounts for the bf16 MXU inputs (f32 accumulation) vs the f32 reference.
    for residual in (False, True):
        out = gat_layer(x, adj, params, num_heads=num_heads, out_dim=out_dim,
                        residual=residual)
        out = jax.block_until_ready(out)
        ref = gat_layer_ref(x, adj, params, num_heads=num_heads, out_dim=out_dim,
                            residual=residual)
        np.testing.assert_allclose(np.asarray(out), np.asarray(ref), rtol=2e-2, atol=2e-2)

    print("KERNEL_OK")
</pallas_src>

<mosaic_0001>
module attributes {stable_mosaic.version = 11 : i64} {
  func.func @_proj_kernel(%arg0: i32, %arg1: memref<128x32xf32, #tpu.memory_space<vmem>>, %arg2: memref<32x256xf32, #tpu.memory_space<vmem>>, %arg3: memref<256x4xf32, #tpu.memory_space<vmem>>, %arg4: memref<128x256xbf16, #tpu.memory_space<vmem>>, %arg5: memref<128x4xf32, #tpu.memory_space<vmem>>) attributes {dimension_semantics = [#tpu.dimension_semantics<parallel>], iteration_bounds = array<i64: 2>, scalar_prefetch = 0 : i64, scratch_operands = 0 : i64, tpu.core_type = #tpu.core_type<tc>, window_params = [{transform_indices = @transform_0, window_bounds = array<i64: 128, 32>}, {pipeline_mode = #tpu.pipeline_mode<synchronous>, transform_indices = @transform_1, window_bounds = array<i64: 32, 256>}, {pipeline_mode = #tpu.pipeline_mode<synchronous>, transform_indices = @transform_2, window_bounds = array<i64: 256, 4>}, {transform_indices = @transform_3, window_bounds = array<i64: 128, 256>}, {transform_indices = @transform_4, window_bounds = array<i64: 128, 4>}]} {
    %c0 = arith.constant 0 : index
    %c0_0 = arith.constant 0 : index
    %0 = vector.load %arg1[%c0, %c0_0] : memref<128x32xf32, #tpu.memory_space<vmem>>, vector<128x32xf32>
    %1 = arith.truncf %0 : vector<128x32xf32> to vector<128x32xbf16>
    %c0_1 = arith.constant 0 : index
    %c0_2 = arith.constant 0 : index
    %2 = vector.load %arg2[%c0_1, %c0_2] : memref<32x256xf32, #tpu.memory_space<vmem>>, vector<32x256xf32>
    %3 = arith.truncf %2 : vector<32x256xf32> to vector<32x256xbf16>
    %cst = arith.constant dense<0.000000e+00> : vector<128x256xf32>
    %4 = tpu.matmul %1, %3, %cst {dimension_numbers = #tpu.dot_dimension_numbers<[1], [0], [0], [1], [0, 0, 1, 1], [], []>} : vector<128x32xbf16>, vector<32x256xbf16>, vector<128x256xf32> -> vector<128x256xf32>
    %c0_3 = arith.constant 0 : index
    %c0_4 = arith.constant 0 : index
    %5 = vector.load %arg3[%c0_3, %c0_4] : memref<256x4xf32, #tpu.memory_space<vmem>>, vector<256x4xf32>
    %cst_5 = arith.constant dense<0.000000e+00> : vector<128x4xf32>
    %6 = tpu.matmul %4, %5, %cst_5 {dimension_numbers = #tpu.dot_dimension_numbers<[1], [0], [0], [1], [0, 0, 1, 1], [], []>} : vector<128x256xf32>, vector<256x4xf32>, vector<128x4xf32> -> vector<128x4xf32>
    %c0_6 = arith.constant 0 : index
    %c0_7 = arith.constant 0 : index
    %7 = vector.load %arg5[%c0_6, %c0_7] : memref<128x4xf32, #tpu.memory_space<vmem>>, vector<128x4xf32>
    tpu.vector_store %arg5[%c0_6, %c0_7], %6 {strides = array<i32>} : memref<128x4xf32, #tpu.memory_space<vmem>>, vector<128x4xf32>,
    %8 = arith.truncf %4 : vector<128x256xf32> to vector<128x256xbf16>
    %c0_8 = arith.constant 0 : index
    %c0_9 = arith.constant 0 : index
    %9 = vector.load %arg4[%c0_8, %c0_9] : memref<128x256xbf16, #tpu.memory_space<vmem>>, vector<128x256xbf16>
    tpu.vector_store %arg4[%c0_8, %c0_9], %8 {strides = array<i32>} : memref<128x256xbf16, #tpu.memory_space<vmem>>, vector<128x256xbf16>,
    return
  }
  func.func @transform_0(%arg0: i32) -> (i32, i32) {
    %c0_i32 = arith.constant 0 : i32
    %c0_i32_0 = arith.constant 0 : i32
    return %arg0, %c0_i32 : i32, i32
  }
  func.func @transform_1(%arg0: i32) -> (i32, i32) {
    %c0_i32 = arith.constant 0 : i32
    %c0_i32_0 = arith.constant 0 : i32
    %c0_i32_1 = arith.constant 0 : i32
    return %c0_i32, %c0_i32_0 : i32, i32
  }
  func.func @transform_2(%arg0: i32) -> (i32, i32) {
    %c0_i32 = arith.constant 0 : i32
    %c0_i32_0 = arith.constant 0 : i32
    %c0_i32_1 = arith.constant 0 : i32
    return %c0_i32, %c0_i32_0 : i32, i32
  }
  func.func @transform_3(%arg0: i32) -> (i32, i32) {
    %c0_i32 = arith.constant 0 : i32
    %c0_i32_0 = arith.constant 0 : i32
    return %arg0, %c0_i32 : i32, i32
  }
  func.func @transform_4(%arg0: i32) -> (i32, i32) {
    %c0_i32 = arith.constant 0 : i32
    %c0_i32_0 = arith.constant 0 : i32
    return %arg0, %c0_i32 : i32, i32
  }
}

</mosaic_0001>

<bundles_post_ra>
// kernel: tpu_custom_call.1
= control target key start
LH: loop header
LB: loop body
LE: loop exit
PB: predicated region body
PF: predicated region fallthrough
CT: control target
= control target key end

     0   :  { %10 = vsyncpa [#allocation3], 0  ;;  %s1448_s0 = inlined_call_operand.vmem [shape: f32[256,32], index: 0, kind: input, shape index: {}]   ;;  %s1449_s1 = inlined_call_operand.vmem [shape: f32[32,256], index: 1, kind: input, shape index: {}]   ;;  %s1450_s2 = inlined_call_operand.vmem [shape: f32[256,4], index: 2, kind: input, shape index: {}]   ;;  %s1451_s3 = inlined_call_operand.hbm [shape: bf16[256,256], index: 3, kind: output, shape index: {0}]   ;;  %s1452_s4 = inlined_call_operand.vmem [shape: f32[256,4], index: 4, kind: output, shape index: {1}]  }
   0x1   :  { %12 = vsyncpa [#allocation3 + $0x1], 0  ;;  %s1125_s15 = smov 0   ;;  %s1127_s16 = smov 0  }
   0x2   :  { %s1129_s17 = smov 0   ;;  %s1131_s18 = smov 0  }
   0x3 LB: > { %s1146_s19 = sadd.s32 4294967295, %s1094_s18   ;;  %s805_s20 = sadd.s32 4294967294, %s1094_s18   ;;  %s1094_s18 = sphi %s1131_s18, %s1458_s18   ;;  %s1090_s17 = sphi %s1129_s17, %s1457_s17   ;;  %s1086_s16 = sphi %s1127_s16, %s1456_s16   ;;  %s1082_s15 = sphi %s1125_s15, %s1455_s15  }
   0x4   : > { %s1150_s21 = sadd.s32 1, %s1094_s18   ;;  %s93_s22 = sadd.s32 1, %s1090_s17 }
   0x5   : > { %s90_s23 = ssub.s32 %s1094_s18, %s1150_s21  ;;  %p103_p0 = scmp.ne.s32.totalorder %s1090_s17, %s1086_s16 }
   0x6   : > { %p91_p1 = scmp.eq.s32.totalorder %s90_s23, 0  ;;  %p104_p2 = scmp.eq.s32.totalorder %s1146_s19, 1 }
   0x7   : > { %p109_p3 = scmp.ne.s32.totalorder %s1086_s16, %s1082_s15  ;;  %p110_p4 = scmp.eq.s32.totalorder %s805_s20, 1 }
   0x8   : > { %s1161_s24 = scalar_select %p91_p1, %s1090_s17, %s93_s22  }
   0x9   : > { %p1163_p5 = por %p104_p2, %p103_p0  ;;  %p1167_p6 = por %p110_p4, %p109_p3 }
   0xa   : > { %p808_p7 = scmp.ge.s32.totalorder %s1094_s18, 1  ;;  %p169_p8 = scmp.lt.s32.totalorder %s1094_s18, 3 }
   0xc   : > { %p170_p9 = pnand %p808_p7, %p169_p8 }
   0xd   : > { %v239_v0 = vld [vmem:[%s1449_s1 + $0x8] sm:$0xff] (!%p170_p9)  ;;  %v241_v1 = vld [vmem:[%s1449_s1 + $0x18] sm:$0xff] (!%p170_p9)  ;;  %v238_v2 = vld [vmem:[%s1449_s1] sm:$0xff] (!%p170_p9)  ;;  %s810_s7 = sshll.u32 (!%p170_p9), %s1146_s19, 4  ;;  %v1096_v7 = vmov (!%p170_p9), 0   ;;  %vm250_vm0 = vcmask (!%p170_p9), 261120  }
   0xe   : > { %173 = sbr.rel (%p170_p9) target bundleno = 517 (0x205), region = 32  ;;  %v247_v3 = vpack.c.bf16 (!%p170_p9), %v241_v1, %v239_v0  ;;  %v240_v4 = vld [vmem:[%s1449_s1 + $0x10] sm:$0xff] (!%p170_p9)  ;;  %v243_v5 = vld [vmem:[%s1449_s1 + $0x28] sm:$0xff] (!%p170_p9)  ;;  %v245_v6 = vld [vmem:[%s1449_s1 + $0x38] sm:$0xff] (!%p170_p9)  ;;  %307 = vmatprep.mubr.bf16.mxu0 (!%p170_p9), %v1096_v7  ;;  %p201_p10 = scmp.lt.s32.totalorder (!%p170_p9), %s810_s7, 31 }
   0xf   : > { %v246_v8 = vpack.c.bf16 (!%p170_p9), %v240_v4, %v238_v2  ;;  %v249_v9 = vpack.c.bf16 (!%p170_p9), %v245_v6, %v243_v5  ;;  %v242_v10 = vld [vmem:[%s1449_s1 + $0x20] sm:$0xff] (!%p170_p9)  ;;  %v244_v11 = vld [vmem:[%s1449_s1 + $0x30] sm:$0xff] (!%p170_p9)  ;;  %v405_v13 = vld [vmem:[%s1450_s2 + $0x88] sm:$0xff] (!%p170_p9)  ;;  %s190_s12 = sand.u32 (!%p170_p9), 1, %s1086_s16   ;;  %s861_s20 = sshll.u32 (!%p170_p9), %s1146_s19, 11 }
  0x10   : > { %v404_v12 = vld [vmem:[%s1450_s2 + $0x80] sm:$0xff] (!%p170_p9)  ;;  %275 = vmatprep.subr.bf16.mxu0 (!%p170_p9), %v247_v3  ;;  %v389_v15 = vld [vmem:[%s1450_s2 + $0x8] sm:$0xff] (!%p170_p9)  ;;  %v248_v16 = vpack.c.bf16 (!%p170_p9), %v244_v11, %v242_v10  ;;  %v406_v18 = vld [vmem:[%s1450_s2 + $0x90] sm:$0xff] (!%p170_p9)  ;;  %s809_s13 = sshll.u32 (!%p170_p9), %s190_s12, 7  ;;  %s1362_s29 = scalar_lea.hbm (!%p170_p9), %s1451_s3, %s861_s20 }
  0x11   : > { %v388_v14 = vld [vmem:[%s1450_s2] sm:$0xff] (!%p170_p9)  ;;  %276 = vmatpush1.bf16.msra.mxu0 (!%p170_p9), %v246_v8  ;;  %v942_v17 = vpack.c.bf16 (!%p170_p9), %v405_v13, %v404_v12  ;;  %v407_v19 = vld [vmem:[%s1450_s2 + $0x98] sm:$0xff] (!%p170_p9)  ;;  %v390_v22 = vld [vmem:[%s1450_s2 + $0x10] sm:$0xff] (!%p170_p9)  ;;  %s1368_s30 = scalar_lea.sflag (!%p170_p9), [#allocation3], %s190_s12  ;;  %s1097_s19 = smov (!%p170_p9), [#allocation2]  }
  0x12   : > { %277 = vmatprep.subr.bf16.mxu0 (!%p170_p9), %v249_v9  ;;  %v944_v20 = vpack.c.bf16 (!%p170_p9), %v389_v15, %v388_v14  ;;  %v946_v21 = vpack.c.bf16 (!%p170_p9), %v407_v19, %v406_v18  ;;  %v391_v23 = vld [vmem:[%s1450_s2 + $0x18] sm:$0xff] (!%p170_p9)  ;;  %v408_v27 = vld [vmem:[%s1450_s2 + $0xa0] sm:$0xff] (!%p170_p9)  ;;  %v409_v28 = vld [vmem:[%s1450_s2 + $0xa8] sm:$0xff] (!%p170_p9)  ;;  %s1036_s6 = sshll.u32 (!%p170_p9), %s1097_s19, 4  ;;  %s1037_s6 = int_to_ptr.vmem [resolvable:$false] %s1036_s6 }
  0x13   : > { %974 = vmatprep.subr.bf16.mxu1 (!%p170_p9), %v942_v17  ;;  %v948_v29 = vpack.c.bf16 (!%p170_p9), %v391_v23, %v390_v22  ;;  %v392_v30 = vld [vmem:[%s1450_s2 + $0x20] sm:$0xff] (!%p170_p9)  ;;  %v393_v31 = vld [vmem:[%s1450_s2 + $0x28] sm:$0xff] (!%p170_p9)  ;;  %v950_v32 = vpack.c.bf16 (!%p170_p9), %v409_v28, %v408_v27  ;;  %v410_v33 = vld [vmem:[%s1450_s2 + $0xb0] sm:$0xff] (!%p170_p9)  ;;  %s1038_s8 = scalar_lea.vmem (!%p170_p9), %s1037_s6, 4096 }
  0x14   : > { %982 = vmatpush3.bf16.msra.mxu1 (!%p170_p9), %v944_v20  ;;  %v411_v36 = vld [vmem:[%s1450_s2 + $0xb8] sm:$0xff] (!%p170_p9)  ;;  %v952_v37 = vpack.c.bf16 (!%p170_p9), %v393_v31, %v392_v30  ;;  %v394_v39 = vld [vmem:[%s1450_s2 + $0x30] sm:$0xff] (!%p170_p9)  ;;  %v412_v42 = vld [vmem:[%s1450_s2 + $0xc0] sm:$0xff] (!%p170_p9) }
  0x15   : > { %s1460_s7 = smov (!%p201_p10, %s810_s7), 31  ;;  %278 = vmatpush1.bf16.msra.mxu0 %v248_v16  ;;  %975 = vmatprep.subr.bf16.mxu1 %v946_v21  ;;  %v954_v38 = vpack.c.bf16 %v411_v36, %v410_v33  ;;  %v395_v40 = vld [vmem:[%s1450_s2 + $0x38] sm:$0xff]  ;;  %v413_v43 = vld [vmem:[%s1450_s2 + $0xc8] sm:$0xff]  ;;  %v396_v45 = vld [vmem:[%s1450_s2 + $0x40] sm:$0xff] }
  0x16   : > { %s811_s14 = sshll.u32 %s1460_s7, 3  ;;  %943 = vmatprep.subr.bf16.mxu0 %v942_v17  ;;  %v956_v44 = vpack.c.bf16 %v395_v40, %v394_v39  ;;  %v397_v46 = vld [vmem:[%s1450_s2 + $0x48] sm:$0xff]  ;;  %v958_v47 = vpack.c.bf16 %v413_v43, %v412_v42  ;;  %v414_v48 = vld [vmem:[%s1450_s2 + $0xd0] sm:$0xff]  ;;  %v415_v49 = vld [vmem:[%s1450_s2 + $0xd8] sm:$0xff] }
  0x17   : > { %s1225_s23 = scalar_lea.vmem %s1448_s0, %s811_s14  ;;  %v960_v52 = vpack.c.bf16 %v397_v46, %v396_v45  ;;  %v962_v53 = vpack.c.bf16 %v415_v49, %v414_v48  ;;  %v398_v54 = vld [vmem:[%s1450_s2 + $0x50] sm:$0xff]  ;;  %v399_v55 = vld [vmem:[%s1450_s2 + $0x58] sm:$0xff]  ;;  %v416_v57 = vld [vmem:[%s1450_s2 + $0xe0] sm:$0xff] }
  0x18   : > { %v214_v24 = vld [vmem:[%s1225_s23] sm:$0xff]  ;;  %v215_v25 = vld [vmem:[%s1225_s23 + $0x8] sm:$0xff]  ;;  %983 = vmatpush3.bf16.msra.mxu1 %v948_v29  ;;  %v216_v34 = vld [vmem:[%s1225_s23 + $0x10] sm:$0xff]  ;;  %v964_v59 = vpack.c.bf16 %v399_v55, %v398_v54 }
  0x19   : > { %v230_v26 = vpack.c.bf16 %v215_v25, %v214_v24  ;;  %v217_v35 = vld [vmem:[%s1225_s23 + $0x18] sm:$0xff]  ;;  %976 = vmatprep.subr.bf16.mxu1 %v950_v32  ;;  %v218_v50 = vld [vmem:[%s1225_s23 + $0x20] sm:$0xff]  ;;  %v219_v51 = vld [vmem:[%s1225_s23 + $0x28] sm:$0xff] }
  0x1a   : > { %v231_v41 = vpack.c.bf16 %v217_v35, %v216_v34  ;;  %v232_v56 = vpack.c.bf16 %v219_v51, %v218_v50  ;;  %v417_v58 = vld [vmem:[%s1450_s2 + $0xe8] sm:$0xff]  ;;  %v400_v60 = vld [vmem:[%s1450_s2 + $0x60] sm:$0xff]  ;;  %v418_v63 = vld [vmem:[%s1450_s2 + $0xf0] sm:$0xff] }
  0x1b   : > { %814 = vmatmul.mubr.msk.bf16.vlgmr.msra.gmra.mrb[0].mxu0 %vm250_vm0, %v230_v26  ;;  %v401_v61 = vld [vmem:[%s1450_s2 + $0x68] sm:$0xff]  ;;  %v966_v62 = vpack.c.bf16 %v417_v58, %v416_v57  ;;  %v419_v0 = vld [vmem:[%s1450_s2 + $0xf8] sm:$0xff]  ;;  %v220_v1 = vld [vmem:[%s1225_s23 + $0x30] sm:$0xff] }
  0x1c   : > { %317 = vmatprep.mubr.bf16.mxu0 %v1096_v7  ;;  %945 = vmatpush3.bf16.msra.mxu0 %v944_v20  ;;  %v221_v2 = vld [vmem:[%s1225_s23 + $0x38] sm:$0xff]  ;;  %v968_v3 = vpack.c.bf16 %v401_v61, %v400_v60  ;;  %v970_v4 = vpack.c.bf16 %v419_v0, %v418_v63  ;;  %v222_v6 = vld [vmem:[%s1225_s23 + $0x40] sm:$0xff]  ;;  %v223_v8 = vld [vmem:[%s1225_s23 + $0x48] sm:$0xff] }
  0x1d   : > { %947 = vmatprep.subr.bf16.mxu0 %v946_v21  ;;  %984 = vmatpush3.bf16.msra.mxu1 %v952_v37  ;;  %v233_v5 = vpack.c.bf16 %v221_v2, %v220_v1  ;;  %v234_v9 = vpack.c.bf16 %v223_v8, %v222_v6  ;;  %v224_v10 = vld [vmem:[%s1225_s23 + $0x50] sm:$0xff]  ;;  %v225_v11 = vld [vmem:[%s1225_s23 + $0x58] sm:$0xff]  ;;  %v226_v13 = vld [vmem:[%s1225_s23 + $0x60] sm:$0xff] }
  0x1e   : > { %977 = vmatprep.subr.bf16.mxu1 %v954_v38  ;;  %v235_v12 = vpack.c.bf16 %v225_v11, %v224_v10  ;;  %v227_v14 = vld [vmem:[%s1225_s23 + $0x68] sm:$0xff]  ;;  %v228_v16 = vld [vmem:[%s1225_s23 + $0x70] sm:$0xff]  ;;  %v229_v17 = vld [vmem:[%s1225_s23 + $0x78] sm:$0xff]  ;;  %s1339_s23 = scalar_lea.vmem [#allocation2], %s809_s13 }
  0x1f   : > { %v236_v15 = vpack.c.bf16 %v227_v14, %v226_v13  ;;  %v237_v18 = vpack.c.bf16 %v229_v17, %v228_v16  ;;  %v402_v19 = vld [vmem:[%s1450_s2 + $0x70] sm:$0xff]  ;;  %v403_v20 = vld [vmem:[%s1450_s2 + $0x78] sm:$0xff]  ;;  %s714_s22 = sshll.u32 %s1339_s23, 4  ;;  %s1364_s22 = int_to_ptr.vmem [resolvable:$true] %s714_s22 }
  0x20   : > { %949 = vmatpush3.bf16.msra.mxu0 %v948_v29  ;;  %v972_v21 = vpack.c.bf16 %v403_v20, %v402_v19  ;;  %s1032_s5 = scalar_lea.vmem %s1364_s22, 2048  ;;  %p1039_p0 = scmp.lt.s32.totalorder %s1364_s22, %s1037_s6 }
  0x21   : > { %951 = vmatprep.subr.bf16.mxu0 %v950_v32  ;;  %985 = vmatpush3.bf16.msra.mxu1 %v956_v44  ;;  %p1033_p11 = scmp.ne.s32.totalorder %s1364_s22, %s1032_s5  ;;  %p1040_p1 = scmp.lt.s32.totalorder %s1038_s8, %s1032_s5 }
  0x22   : > { %978 = vmatprep.subr.bf16.mxu1 %v958_v47 }
  0x23   : > { %815 = vmatmul.mubr.msk.bf16.gmra.mrb[4].mxu0 %vm250_vm0, %v231_v41  ;;  %p1034_p12 = pnand %p1033_p11, %p1163_p5  ;;  %p1041_p2 = por %p1040_p1, %p1039_p0 }
  0x24   : > { %327 = vmatprep.mubr.bf16.mxu0 %v1096_v7  ;;  %953 = vmatpush3.bf16.msra.mxu0 %v952_v37 }
  0x25   : > { %955 = vmatprep.subr.bf16.mxu0 %v954_v38  ;;  %986 = vmatpush3.bf16.msra.mxu1 %v960_v52  ;;  %p1035_p13 = pneg %p1034_p12 }
  0x26   : > { %979 = vmatprep.subr.bf16.mxu1 %v962_v53 }
  0x27   : > { %p1042_p3 = pnand %p1041_p2, %p1035_p13 }
  0x28   : > { %957 = vmatpush3.bf16.msra.mxu0 %v956_v44 }
  0x29   : > { %959 = vmatprep.subr.bf16.mxu0 %v958_v47  ;;  %987 = vmatpush3.bf16.msra.mxu1 %v964_v59 }
  0x2a   : > { %980 = vmatprep.subr.bf16.mxu1 %v966_v62 }
  0x2b   : > { %816 = vmatmul.mubr.msk.bf16.gmra.mrb[8].mxu0 %vm250_vm0, %v232_v56 }
  0x2c   : > { %337 = vmatprep.mubr.bf16.mxu0 %v1096_v7  ;;  %961 = vmatpush3.bf16.msra.mxu0 %v960_v52 }
  0x2d   : > { %963 = vmatprep.subr.bf16.mxu0 %v962_v53  ;;  %988 = vmatpush3.bf16.msra.mxu1 %v968_v3 }
  0x2e   : > { %981 = vmatprep.subr.bf16.mxu1 %v970_v4 }
  0x30   : > { %965 = vmatpush3.bf16.msra.mxu0 %v964_v59 }
  0x31   : > { %967 = vmatprep.subr.bf16.mxu0 %v966_v62  ;;  %989 = vmatpush3.bf16.msra.mxu1 %v972_v21 }
  0x33   : > { %817 = vmatmul.mubr.msk.bf16.gmra.mrb[12].mxu0 %vm250_vm0, %v233_v5 }
  0x34   : > { %347 = vmatprep.mubr.bf16.mxu0 %v1096_v7  ;;  %969 = vmatpush3.bf16.msra.mxu0 %v968_v3 }
  0x35   : > { %971 = vmatprep.subr.bf16.mxu0 %v970_v4 }
  0x38   : > { %973 = vmatpush3.bf16.msra.mxu0 %v972_v21 }
  0x3b   : > { %818 = vmatmul.mubr.msk.bf16.gmra.mrb[16].mxu0 %vm250_vm0, %v234_v9 }
  0x3c   : > { %357 = vmatprep.mubr.bf16.mxu0 %v1096_v7 }
  0x43   : > { %819 = vmatmul.mubr.msk.bf16.gmra.mrb[20].mxu0 %vm250_vm0, %v235_v12 }
  0x44   : > { %367 = vmatprep.mubr.bf16.mxu0 %v1096_v7 }
  0x4b   : > { %820 = vmatmul.mubr.msk.bf16.gmra.mrb[24].mxu0 %vm250_vm0, %v236_v15 }
  0x4c   : > { %377 = vmatprep.mubr.bf16.mxu0 %v1096_v7 }
  0x53   : > { %821 = vmatmul.mubr.msk.bf16.gmra.mrb[28].mxu0 %vm250_vm0, %v237_v18 }
  0xee   : > { %v309_v7 = vpop.f32.mrb[0].mxu0 }
  0xef   : > { %v311_v22 = vpop.f32.mrb[1].mxu0 }
  0xf0   : > { %v844_v23 = vpack.c.bf16 %v311_v22, %v309_v7  ;;  %v313_v24 = vpop.f32.mrb[2].mxu0  ;;  %484 = vmatprep.mubr.f32.mxu0 %v311_v22 }
  0xf1   : > { %v315_v25 = vpop.f32.mrb[3].mxu0  ;;  %485 = vmatmul.mubr.f32.vlgmr.msra.gmra.mrb[32].mxu0 %v309_v7 }
  0xf2   : > { %678 = vst [vmem:[%s1339_s23] sm:$0xff] %v844_v23  ;;  %v845_v26 = vpack.c.bf16 %v315_v25, %v313_v24  ;;  %489 = vmatprep.mubr.f32.mxu0 %v315_v25 }
  0xf4   : > { %679 = vst [vmem:[%s1339_s23 + $0x8] sm:$0xff] %v845_v26 }
  0xf5   : > { %490 = vmatmul.mubr.f32.gmra.mrb[34].mxu0 %v313_v24 }
  0xf6   : > { %v319_v27 = vpop.f32.mrb[4].mxu0 }
  0xf7   : > { %v321_v28 = vpop.f32.mrb[5].mxu0 }
  0xf8   : > { %v846_v29 = vpack.c.bf16 %v321_v28, %v319_v27  ;;  %v323_v30 = vpop.f32.mrb[6].mxu0  ;;  %494 = vmatprep.mubr.f32.mxu0 %v321_v28 }
  0xf9   : > { %v325_v31 = vpop.f32.mrb[7].mxu0  ;;  %495 = vmatmul.mubr.f32.gmra.mrb[36].mxu0 %v319_v27 }
  0xfa   : > { %680 = vst [vmem:[%s1339_s23 + $0x10] sm:$0xff] %v846_v29  ;;  %v847_v32 = vpack.c.bf16 %v325_v31, %v323_v30  ;;  %499 = vmatprep.mubr.f32.mxu1 %v325_v31 }
  0xfb   : > { %500 = vmatmul.mubr.f32.vlgmr.msra.gmra.mrb[0].mxu1 %v323_v30 }
  0xfc   : > { %681 = vst [vmem:[%s1339_s23 + $0x18] sm:$0xff] %v847_v32 }
  0xfe   : > { %v329_v33 = vpop.f32.mrb[8].mxu0 }
  0xff   : > { %v331_v34 = vpop.f32.mrb[9].mxu0 }
 0x100   : > { %v848_v35 = vpack.c.bf16 %v331_v34, %v329_v33  ;;  %v333_v36 = vpop.f32.mrb[10].mxu0  ;;  %504 = vmatprep.mubr.f32.mxu1 %v331_v34 }
 0x101   : > { %v335_v37 = vpop.f32.mrb[11].mxu0  ;;  %505 = vmatmul.mubr.f32.gmra.mrb[2].mxu1 %v329_v33 }
 0x102   : > { %682 = vst [vmem:[%s1339_s23 + $0x20] sm:$0xff] %v848_v35  ;;  %v849_v38 = vpack.c.bf16 %v335_v37, %v333_v36  ;;  %509 = vmatprep.mubr.f32.mxu1 %v335_v37 }
 0x104   : > { %683 = vst [vmem:[%s1339_s23 + $0x28] sm:$0xff] %v849_v38 }
 0x105   : > { %510 = vmatmul.mubr.f32.gmra.mrb[4].mxu1 %v333_v36 }
 0x106   : > { %v339_v39 = vpop.f32.mrb[12].mxu0 }
 0x107   : > { %v341_v40 = vpop.f32.mrb[13].mxu0 }
 0x108   : > { %v850_v41 = vpack.c.bf16 %v341_v40, %v339_v39  ;;  %v343_v42 = vpop.f32.mrb[14].mxu0  ;;  %514 = vmatprep.mubr.f32.mxu1 %v341_v40 }
 0x109   : > { %v345_v43 = vpop.f32.mrb[15].mxu0  ;;  %515 = vmatmul.mubr.f32.gmra.mrb[6].mxu1 %v339_v39 }
 0x10a   : > { %684 = vst [vmem:[%s1339_s23 + $0x30] sm:$0xff] %v850_v41  ;;  %v851_v44 = vpack.c.bf16 %v345_v43, %v343_v42  ;;  %519 = vmatprep.mubr.f32.mxu1 %v345_v43 }
 0x10c   : > { %685 = vst [vmem:[%s1339_s23 + $0x38] sm:$0xff] %v851_v44 }
 0x10d   : > { %520 = vmatmul.mubr.f32.gmra.mrb[8].mxu1 %v343_v42 }
 0x10e   : > { %v349_v45 = vpop.f32.mrb[16].mxu0 }
 0x10f   : > { %v351_v46 = vpop.f32.mrb[17].mxu0 }
 0x110   : > { %v852_v47 = vpack.c.bf16 %v351_v46, %v349_v45  ;;  %v353_v48 = vpop.f32.mrb[18].mxu0  ;;  %524 = vmatprep.mubr.f32.mxu1 %v351_v46 }
 0x111   : > { %v355_v49 = vpop.f32.mrb[19].mxu0  ;;  %525 = vmatmul.mubr.f32.gmra.mrb[10].mxu1 %v349_v45 }
 0x112   : > { %686 = vst [vmem:[%s1339_s23 + $0x40] sm:$0xff] %v852_v47  ;;  %v853_v50 = vpack.c.bf16 %v355_v49, %v353_v48  ;;  %529 = vmatprep.mubr.f32.mxu1 %v355_v49 }
 0x114   : > { %687 = vst [vmem:[%s1339_s23 + $0x48] sm:$0xff] %v853_v50 }
 0x115   : > { %530 = vmatmul.mubr.f32.gmra.mrb[12].mxu1 %v353_v48 }
 0x116   : > { %v359_v51 = vpop.f32.mrb[20].mxu0 }
 0x117   : > { %v361_v52 = vpop.f32.mrb[21].mxu0 }
 0x118   : > { %v854_v53 = vpack.c.bf16 %v361_v52, %v359_v51  ;;  %v363_v54 = vpop.f32.mrb[22].mxu0  ;;  %534 = vmatprep.mubr.f32.mxu1 %v361_v52 }
 0x119   : > { %v365_v55 = vpop.f32.mrb[23].mxu0  ;;  %535 = vmatmul.mubr.f32.gmra.mrb[14].mxu1 %v359_v51 }
 0x11a   : > { %688 = vst [vmem:[%s1339_s23 + $0x50] sm:$0xff] %v854_v53  ;;  %v855_v56 = vpack.c.bf16 %v365_v55, %v363_v54  ;;  %539 = vmatprep.mubr.f32.mxu1 %v365_v55 }
 0x11c   : > { %689 = vst [vmem:[%s1339_s23 + $0x58] sm:$0xff] %v855_v56 }
 0x11d   : > { %540 = vmatmul.mubr.f32.gmra.mrb[16].mxu1 %v363_v54 }
 0x11e   : > { %v369_v57 = vpop.f32.mrb[24].mxu0 }
 0x11f   : > { %v371_v58 = vpop.f32.mrb[25].mxu0 }
 0x120   : > { %v856_v59 = vpack.c.bf16 %v371_v58, %v369_v57  ;;  %v373_v60 = vpop.f32.mrb[26].mxu0  ;;  %544 = vmatprep.mubr.f32.mxu1 %v371_v58 }
 0x121   : > { %v375_v61 = vpop.f32.mrb[27].mxu0  ;;  %545 = vmatmul.mubr.f32.gmra.mrb[18].mxu1 %v369_v57 }
 0x122   : > { %690 = vst [vmem:[%s1339_s23 + $0x60] sm:$0xff] %v856_v59  ;;  %v857_v62 = vpack.c.bf16 %v375_v61, %v373_v60  ;;  %549 = vmatprep.mubr.f32.mxu1 %v375_v61 }
 0x124   : > { %691 = vst [vmem:[%s1339_s23 + $0x68] sm:$0xff] %v857_v62 }
 0x125   : > { %550 = vmatmul.mubr.f32.gmra.mrb[20].mxu1 %v373_v60 }
 0x126   : > { %v379_v63 = vpop.f32.mrb[28].mxu0 }
 0x127   : > { %v381_v0 = vpop.f32.mrb[29].mxu0 }
 0x128   : > { %v858_v1 = vpack.c.bf16 %v381_v0, %v379_v63  ;;  %v383_v2 = vpop.f32.mrb[30].mxu0  ;;  %554 = vmatprep.mubr.f32.mxu1 %v381_v0 }
 0x129   : > { %v385_v3 = vpop.f32.mrb[31].mxu0  ;;  %555 = vmatmul.mubr.f32.gmra.mrb[22].mxu1 %v379_v63 }
 0x12a   : > { %692 = vst [vmem:[%s1339_s23 + $0x70] sm:$0xff] %v858_v1  ;;  %v859_v4 = vpack.c.bf16 %v385_v3, %v383_v2  ;;  %559 = vmatprep.mubr.f32.mxu1 %v385_v3 }
 0x12c   : > { %693 = vst [vmem:[%s1339_s23 + $0x78] sm:$0xff] %v859_v4 }
 0x12d   : > { %560 = vmatmul.mubr.f32.gmra.mrb[24].mxu1 %v383_v2 }
 0x12e   : > { %1045 = shalt.err (!%p1042_p3)
}
 0x12f   : > { %s1046_s9 = scalar_lea.hbm %s1362_s29, 2048  ;;  %s1050_s12 = scalar_lea.hbm %s1451_s3, 4096 }
 0x130   : > { %p1047_p4 = scmp.ne.s32.totalorder %s1362_s29, %s1046_s9  ;;  %p1051_p9 = scmp.lt.u32.totalorder %s1362_s29, %s1451_s3 }
 0x131   : > { %p1052_p10 = scmp.lt.u32.totalorder %s1050_s12, %s1046_s9  ;;  %p1054_p12 = scmp.lt.u32.totalorder %s1046_s9, %s1362_s29 }
 0x132   : > { %p1048_p7 = pnand %p1047_p4, %p1163_p5 }
 0x133   : > { %p1053_p11 = por %p1052_p10, %p1051_p9 }
 0x134   : > { %p1049_p8 = pneg %p1048_p7 }
 0x135   : > { %p1055_p13 = por %p1054_p12, %p1053_p11 }
 0x137   : > { %p1056_p0 = pnand %p1055_p13, %p1049_p8 }
 0x139   : > { %1059 = shalt.err (!%p1056_p0)
}
 0x13a   : > { %s1098_s20 = smov 128   ;;  %s1099_s27 = smov 8   ;;  %vm565_vm1 = vcmask 31744  }
 0x13b   : > { %990 = dma.vmem_to_hbm [thread:$0]  (%p1163_p5), %s1364_s22, 2048, %s1362_s29, %s1368_s30, %s1098_s20, %s1098_s20, %s1099_s27  }
 0x13c   : > { %s1397_s19 = scalar_lea.vmem %s1452_s4, %s811_s14 }
 0x1c4   : > { %v894_v5 = vpop.f32.mrb[32].mxu0 }
 0x1c5   : > { %v895_v6 = vpop.f32.mrb[33].mxu0 }
 0x1c6   : > { %v896_v8 = vadd.f32 %v895_v6, %v894_v5 }
 0x1c8   : > { %566 = vst.msk [vmem:[%s1397_s19] sm:$0xff] %vm565_vm1, %v896_v8  ;;  %v897_v9 = vpop.f32.mrb[34].mxu0 }
 0x1c9   : > { %v898_v10 = vpop.f32.mrb[35].mxu0 }
 0x1ca   : > { %v899_v11 = vadd.f32 %v898_v10, %v897_v9 }
 0x1cc   : > { %567 = vst.msk [vmem:[%s1397_s19 + $0x8] sm:$0xff] %vm565_vm1, %v899_v11  ;;  %v900_v12 = vpop.f32.mrb[36].mxu0 }
 0x1cd   : > { %v901_v13 = vpop.f32.mrb[37].mxu0 }
 0x1ce   : > { %v902_v14 = vadd.f32 %v901_v13, %v900_v12  ;;  %v903_v15 = vpop.f32.mrb[0].mxu1 }
 0x1cf   : > { %v904_v16 = vpop.f32.mrb[1].mxu1 }
 0x1d0   : > { %568 = vst.msk [vmem:[%s1397_s19 + $0x10] sm:$0xff] %vm565_vm1, %v902_v14  ;;  %v905_v17 = vadd.f32 %v904_v16, %v903_v15 }
 0x1d2   : > { %569 = vst.msk [vmem:[%s1397_s19 + $0x18] sm:$0xff] %vm565_vm1, %v905_v17 }
 0x1d4   : > { %v906_v18 = vpop.f32.mrb[2].mxu1 }
 0x1d5   : > { %v907_v19 = vpop.f32.mrb[3].mxu1 }
 0x1d6   : > { %v908_v20 = vadd.f32 %v907_v19, %v906_v18 }
 0x1d8   : > { %570 = vst.msk [vmem:[%s1397_s19 + $0x20] sm:$0xff] %vm565_vm1, %v908_v20  ;;  %v909_v21 = vpop.f32.mrb[4].mxu1 }
 0x1d9   : > { %v910_v7 = vpop.f32.mrb[5].mxu1 }
 0x1da   : > { %v911_v22 = vadd.f32 %v910_v7, %v909_v21 }
 0x1dc   : > { %571 = vst.msk [vmem:[%s1397_s19 + $0x28] sm:$0xff] %vm565_vm1, %v911_v22  ;;  %v912_v23 = vpop.f32.mrb[6].mxu1 }
 0x1dd   : > { %v913_v24 = vpop.f32.mrb[7].mxu1 }
 0x1de   : > { %v914_v25 = vadd.f32 %v913_v24, %v912_v23 }
 0x1e0   : > { %572 = vst.msk [vmem:[%s1397_s19 + $0x30] sm:$0xff] %vm565_vm1, %v914_v25  ;;  %v915_v26 = vpop.f32.mrb[8].mxu1 }
 0x1e1   : > { %v916_v27 = vpop.f32.mrb[9].mxu1 }
 0x1e2   : > { %v917_v28 = vadd.f32 %v916_v27, %v915_v26 }
 0x1e4   : > { %573 = vst.msk [vmem:[%s1397_s19 + $0x38] sm:$0xff] %vm565_vm1, %v917_v28  ;;  %v918_v29 = vpop.f32.mrb[10].mxu1 }
 0x1e5   : > { %v919_v30 = vpop.f32.mrb[11].mxu1 }
 0x1e6   : > { %v920_v31 = vadd.f32 %v919_v30, %v918_v29 }
 0x1e8   : > { %574 = vst.msk [vmem:[%s1397_s19 + $0x40] sm:$0xff] %vm565_vm1, %v920_v31  ;;  %v921_v32 = vpop.f32.mrb[12].mxu1 }
 0x1e9   : > { %v922_v33 = vpop.f32.mrb[13].mxu1 }
 0x1ea   : > { %v923_v34 = vadd.f32 %v922_v33, %v921_v32 }
 0x1ec   : > { %575 = vst.msk [vmem:[%s1397_s19 + $0x48] sm:$0xff] %vm565_vm1, %v923_v34  ;;  %v924_v35 = vpop.f32.mrb[14].mxu1 }
 0x1ed   : > { %v925_v36 = vpop.f32.mrb[15].mxu1 }
 0x1ee   : > { %v926_v37 = vadd.f32 %v925_v36, %v924_v35 }
 0x1f0   : > { %576 = vst.msk [vmem:[%s1397_s19 + $0x50] sm:$0xff] %vm565_vm1, %v926_v37  ;;  %v927_v38 = vpop.f32.mrb[16].mxu1 }
 0x1f1   : > { %v928_v39 = vpop.f32.mrb[17].mxu1 }
 0x1f2   : > { %v929_v40 = vadd.f32 %v928_v39, %v927_v38 }
 0x1f4   : > { %577 = vst.msk [vmem:[%s1397_s19 + $0x58] sm:$0xff] %vm565_vm1, %v929_v40  ;;  %v930_v41 = vpop.f32.mrb[18].mxu1 }
 0x1f5   : > { %v931_v42 = vpop.f32.mrb[19].mxu1 }
 0x1f6   : > { %v932_v43 = vadd.f32 %v931_v42, %v930_v41 }
 0x1f8   : > { %578 = vst.msk [vmem:[%s1397_s19 + $0x60] sm:$0xff] %vm565_vm1, %v932_v43  ;;  %v933_v44 = vpop.f32.mrb[20].mxu1 }
 0x1f9   : > { %v934_v45 = vpop.f32.mrb[21].mxu1 }
 0x1fa   : > { %v935_v46 = vadd.f32 %v934_v45, %v933_v44 }
 0x1fc   : > { %579 = vst.msk [vmem:[%s1397_s19 + $0x68] sm:$0xff] %vm565_vm1, %v935_v46  ;;  %v936_v47 = vpop.f32.mrb[22].mxu1 }
 0x1fd   : > { %v937_v48 = vpop.f32.mrb[23].mxu1 }
 0x1fe   : > { %v938_v49 = vadd.f32 %v937_v48, %v936_v47 }
 0x200   : > { %580 = vst.msk [vmem:[%s1397_s19 + $0x70] sm:$0xff] %vm565_vm1, %v938_v49  ;;  %v939_v50 = vpop.f32.mrb[24].mxu1 }
 0x201   : > { %v940_v51 = vpop.f32.mrb[25].mxu1 }
 0x202   : > { %v941_v52 = vadd.f32 %v940_v51, %v939_v50 }
 0x204   : > { %581 = vst.msk [vmem:[%s1397_s19 + $0x78] sm:$0xff] %vm565_vm1, %v941_v52 }
 0x205 PF: > { %p996_p5 = scmp.ge.s32.totalorder %s1094_s18, 2  ;;  %s733_s25 = sand.u32 1, %s1082_s15  }
 0x206   : > { %s734_s7 = scalar_lea.sflag [#allocation3], %s733_s25 }
 0x207   : > { %p993_p1 = pnand %p996_p5, %p1167_p6 }
 0x209   : > { %1077 = dma.done.wait (!%p993_p1), %s734_s7, 2048  }
 0x20a   : > { %1079 = vsyncadd (!%p993_p1), %s734_s7, 4294965248  ;;  %p15_p2 = scmp.ge.s32.totalorder %s1150_s21, 4   ;;  %s1455_s15 = smov %s1086_s16 }
 0x20b   : > { %s1456_s16 = smov %s1090_s17  ;;  %s1457_s17 = smov %s1161_s24 }
 0x20c   : > { %s1458_s18 = smov %s1150_s21  ;;  %17 = sbr.rel (!%p15_p2) target bundleno = 3 (0x3), region = 79 }
 0x213   :  { %747 = vsyncpa [#allocation3], 1 }
 0x214   :  { %749 = vsyncpa [#allocation3 + $0x1], 1 }

</bundles_post_ra>
